<compile_context>
chip_gen: v7x
topology: tpu7x:2x2x1
jax: 0.10.0
libtpu: 0.0.40
codegen_flags: <defaults>
</compile_context>

<pallas_src>
import jax
import jax.numpy as jnp
from jax.experimental import pallas as pl
from jax.experimental.pallas import tpu as pltpu


def _model_kernel(x_ref, w_ref, b_ref, o_ref):
    # x_ref: (1,1) in SMEM, w_ref/b_ref: (1,) in SMEM, o_ref: (1,1) in SMEM.
    # Linear(1,1) applied to xo**2 degenerates to a scalar FMA on the
    # scalar path (no VMEM, no vregs, no MXU).
    x = x_ref[0, 0]
    o_ref[0, 0] = x * x * w_ref[0] + b_ref[0]


def _pallas_forward(x, w_s, b_s):
    return pl.pallas_call(
        _model_kernel,
        out_shape=jax.ShapeDtypeStruct((1, 1), jnp.float32),
        in_specs=[
            pl.BlockSpec(memory_space=pltpu.SMEM),   # x       (scalar path)
            pl.BlockSpec(memory_space=pltpu.SMEM),   # weight  (scalar path)
            pl.BlockSpec(memory_space=pltpu.SMEM),   # bias    (scalar path)
        ],
        out_specs=pl.BlockSpec(memory_space=pltpu.SMEM),  # (1,1) scalar out
    )(x, w_s, b_s)


@jax.jit
def model_forward(xo, weight_scalar, bias_scalar):
    """JAX/Pallas equivalent of Model.forward (minus graphviz side effects)."""
    x = xo
    # Static (trace-time) checks: only emit reshape/astype HLOs if needed.
    if x.shape != (1, 1):
        x = jnp.reshape(x, (1, 1))          # xo.reshape(1, 1)
    if x.dtype != jnp.float32:
        x = x.astype(jnp.float32)
    return _pallas_forward(x, weight_scalar, bias_scalar)
    # TODO(synk): make_dot / dot.render / print(named_parameters()) are
    # debugging side effects with no Pallas/JAX equivalent; compute is above.


if __name__ == "__main__":
    # Parameters per Model.__init__: weight.fill_(1), bias.fill_(1).
    # Flattened / cast ONCE here (outside the jitted per-call path).
    weight_scalar = jnp.ones((1,), dtype=jnp.float32)   # == W[0, 0]
    bias_scalar = jnp.ones((1,), dtype=jnp.float32)     # == b[0]

    # Deterministic scalar-like input (original script uses x = [[1.0]]).
    key = jax.random.PRNGKey(0)
    xo = jax.random.normal(key, (1, 1), dtype=jnp.float32)

    y = model_forward(xo, weight_scalar, bias_scalar)
    jax.block_until_ready(y)

    # Reference: y = (xo.reshape(1,1) ** 2) * W + b  (W = b = 1)
    y_ref = jnp.reshape(xo, (1, 1)) ** 2 * weight_scalar[0] + bias_scalar[0]
    assert y.shape == (1, 1)
    assert y.dtype == jnp.float32
    assert jnp.allclose(y, y_ref, atol=1e-6), (y, y_ref)

    print("KERNEL_OK")
</pallas_src>

<mosaic_0001>
module attributes {stable_mosaic.version = 11 : i64} {
  func.func @_model_kernel(%arg0: memref<1x1xf32, #tpu.memory_space<smem>>, %arg1: memref<1xf32, #tpu.memory_space<smem>>, %arg2: memref<1xf32, #tpu.memory_space<smem>>, %arg3: memref<1x1xf32, #tpu.memory_space<smem>>) attributes {dimension_semantics = [], scalar_prefetch = 0 : i64, scratch_operands = 0 : i64, tpu.core_type = #tpu.core_type<tc>} {
    %c0 = arith.constant 0 : index
    %c0_0 = arith.constant 0 : index
    %0 = memref.load %arg0[%c0, %c0_0] : memref<1x1xf32, #tpu.memory_space<smem>>
    %1 = arith.mulf %0, %0 : f32
    %c0_1 = arith.constant 0 : index
    %2 = memref.load %arg1[%c0_1] : memref<1xf32, #tpu.memory_space<smem>>
    %3 = arith.mulf %1, %2 : f32
    %c0_2 = arith.constant 0 : index
    %4 = memref.load %arg2[%c0_2] : memref<1xf32, #tpu.memory_space<smem>>
    %5 = arith.addf %3, %4 : f32
    %c0_3 = arith.constant 0 : index
    %c0_4 = arith.constant 0 : index
    %6 = memref.load %arg3[%c0_3, %c0_4] : memref<1x1xf32, #tpu.memory_space<smem>>
    memref.store %5, %arg3[%c0_3, %c0_4] : memref<1x1xf32, #tpu.memory_space<smem>>
    return
  }
}

</mosaic_0001>

<bundles_post_ra>
// kernel: model_forward.1
= control target key start
LH: loop header
LB: loop body
LE: loop exit
PB: predicated region body
PF: predicated region fallthrough
CT: control target
= control target key end

     0   :  { %11 = vsyncpa [#allocation6], 0  ;;  %s95_s0 = inlined_call_operand.<no memory space> [shape: f32[1,1], index: 0, kind: input, shape index: {}]   ;;  %s96_s1 = inlined_call_operand.<no memory space> [shape: f32[1], index: 1, kind: input, shape index: {}]   ;;  %s97_s2 = inlined_call_operand.<no memory space> [shape: f32[1], index: 2, kind: input, shape index: {}]   ;;  %s98_s3 = inlined_call_operand.hbm [shape: f32[1,1], index: 3, kind: output, shape index: {}]  }
   0x1   :  { %s19_s14 = smul.f32 %s95_s0, %s95_s0  ;;  %s40_s23 = scalar_lea.hbm %s98_s3, 16 }
   0x2   :  { %p41_p0 = scmp.ne.s32.totalorder %s98_s3, %s40_s23  ;;  %p44_p1 = scmp.lt.u32.totalorder %s40_s23, %s98_s3 }
   0x3   :  { %s21_s17 = smul.f32 %s19_s14, %s96_s1 }
   0x4   :  { %p46_p2 = pnand %p44_p1, %p41_p0 }
   0x5   :  { %s23_s20 = sadd.f32 %s21_s17, %s97_s2 }
   0x7   :  { %25 = sst [smem:[#allocation5]] %s23_s20 }
   0x8   :  { %49 = shalt.err (!%p46_p2)
}
   0x9   :  { %s52_s0 = smov [#allocation5]  }
   0xa   :  { %33 = dma.smem_to_hbm %s52_s0, 16, %s98_s3, [#allocation6]  }
   0xb   :  { %50 = dma.done.wait [#allocation6], 16  }
   0xc   :  { %51 = vsyncadd [#allocation6], 4294967280 }
   0xd   :  { %37 = sfence }
   0xe   :  { %38 = vsyncpa [#allocation6], 1 }

</bundles_post_ra>
